<compile_context>
chip_gen: v5e
topology: v5e:2x2
jax: 0.10.0
libtpu: 0.0.40
codegen_flags: <defaults>
</compile_context>

<pallas_src>
import functools
from math import sqrt

import jax
import jax.numpy as jnp
import numpy as np
from jax.experimental import pallas as pl
from jax.experimental.pallas import tpu as pltpu


def _wnconv2d_kernel(x_ref, m_ref, w_ref, b_ref, o_ref, *, KH, KW, Cin, R, T,
                     activation):
    # x_ref: (Cin, T + halo)     flat input window (tile + halo) for this step
    # m_ref: (KW, T)             0/1 mask realizing the left/right edge padding
    # w_ref: (Cout, KH*KW*Cin)   weight-normalized weights, rows = (kh, kw, ci)
    # b_ref: (Cout, 1)           bias (f32)
    # o_ref: (Cout, T)           flattened-spatial output tile (lane dense)
    xw = x_ref[...]                                   # (Cin, T + halo)
    m = m_ref[...]                                    # (KW, T)
    wall = w_ref[...]                                 # (Cout, KH*KW*Cin)

    acc = jnp.zeros(o_ref.shape, jnp.float32)         # (Cout, T) f32 accumulator
    for kh in range(KH):                              # static, small kernel
        for kw in range(KW):
            off = kh * R + kw                         # static flat shift of tap
            tap = kh * KW + kw
            # contiguous static lane slice + edge mask (no strided slices,
            # no reshapes, no relayouts inside the hot loop)
            piece = xw[:, off:off + T] * m[kw:kw + 1, :]          # (Cin, T)
            acc += jnp.dot(wall[:, tap * Cin:(tap + 1) * Cin], piece,
                           preferred_element_type=jnp.float32)    # (Cout, T)

    acc = acc + b_ref[...]                            # f32 epilogue
    if activation is not None:
        acc = activation(acc)                         # e.g. ELU -> EUP slot
    o_ref[...] = acc.astype(o_ref.dtype)


def wn_conv2d(x, v, g, b, *, stride=1, padding=0, activation=None):
    """Forward of WNConv2d. x: (N, Cin, H, W); v: (Cout, Cin, KH, KW);
    g: (Cout, 1, 1, 1); b: (Cout,). Returns (N, Cout, Ho, Wo) in NCHW."""
    if stride != 1:
        # TODO(synk): stride > 1 has no fast Pallas path here (PixelSNAIL's
        # WNConv2d always uses stride=1).
        raise NotImplementedError("wn_conv2d Pallas kernel supports stride=1")

    N, Cin, H, W = x.shape
    Cout, _, KH, KW = v.shape
    pad = int(padding)
    dtype = x.dtype

    Ho = H + 2 * pad - KH + 1
    Wo = W + 2 * pad - KW + 1
    assert Ho > 0 and Wo > 0

    # ---- weight norm (dim=0) + im2col-style weight layout (rows = kh, kw, ci)
    v32 = v.astype(jnp.float32)
    norm = jnp.sqrt(jnp.sum(v32 * v32, axis=(1, 2, 3), keepdims=True))
    w = g.astype(jnp.float32) * v32 / norm                      # (Cout,Cin,KH,KW)
    wmat = jnp.transpose(w, (0, 2, 3, 1)).reshape(Cout, KH * KW * Cin)
    wmat = wmat.astype(dtype)            # bf16 inputs -> bf16 MXU operands
    bias = b.reshape(Cout, 1).astype(jnp.float32)

    # ---- flat geometry: output position p = i*R + j, input row stride R
    R = max(W, Wo)                       # flat row stride (>= stored row width)
    ofs = pad * R + pad                  # flat offset of x[.., 0, 0] in buffer
    halo = (KH - 1) * R + (KW - 1)       # maximum per-tap shift
    flat_len = Ho * R                    # flat output positions computed

    # spatial tile: multiple of 128 lanes, aim for >= 2 tiles, cap at 512 lanes
    n128 = pl.cdiv(flat_len, 128)
    T = 128 * max(1, min(4, n128 // 2))
    S = pl.cdiv(flat_len, T)             # spatial grid extent
    P = S * T                            # padded flat output length
    TW = T + halo                        # input window length per tile

    # ---- zero-embedded flat input (also realizes the top/bottom padding)
    if R != W:                           # store rows at stride R (rare case)
        x = jnp.pad(x, ((0, 0), (0, 0), (0, 0), (0, R - W)))
    flat = x.reshape(N, Cin, H * R)
    L = max(P + halo, ofs + H * R)
    buf = jnp.pad(flat, ((0, 0), (0, 0), (ofs, L - ofs - H * R)))

    # Per-tile input windows (tile + halo).  Overlapping blocks can't be
    # expressed by a plain BlockSpec, so the small halo overlap is materialized
    # once here and each grid step gets its window via its block index.
    xwin = jnp.stack([buf[:, :, s * T:s * T + TW] for s in range(S)], axis=1)
    # xwin: (N, S, Cin, TW)

    # ---- per-tap 0/1 mask for the left/right (W-direction) padding
    cols = np.arange(P) % R                                      # absolute col j
    cc = cols[None, :] + np.arange(KW)[:, None] - pad            # (KW, P)
    mask_np = ((cc >= 0) & (cc < W)).astype(np.float32)
    mask = jnp.asarray(mask_np.reshape(KW, S, T).transpose(1, 0, 2), dtype=dtype)
    # mask: (S, KW, T)

    kernel = functools.partial(_wnconv2d_kernel, KH=KH, KW=KW, Cin=Cin, R=R,
                               T=T, activation=activation)

    out_flat = pl.pallas_call(
        kernel,
        out_shape=jax.ShapeDtypeStruct((N, Cout, P), dtype),
        grid=(N, S),
        in_specs=[
            pl.BlockSpec((None, None, Cin, TW), lambda n, s: (n, s, 0, 0)),
            pl.BlockSpec((None, KW, T), lambda n, s: (s, 0, 0)),
            pl.BlockSpec((Cout, KH * KW * Cin), lambda n, s: (0, 0)),
            pl.BlockSpec((Cout, 1), lambda n, s: (0, 0)),
        ],
        out_specs=pl.BlockSpec((None, Cout, T), lambda n, s: (n, 0, s)),
        compiler_params=pltpu.CompilerParams(
            dimension_semantics=("parallel", "parallel"),
            vmem_limit_bytes=32 * 1024 * 1024),
    )(xwin, mask, wmat, bias)

    # (N, Cout, P) -> (N, Cout, Ho, Wo): a free reshape for "same" convs
    out = out_flat[:, :, :flat_len].reshape(N, Cout, Ho, R)
    if R != Wo:
        out = out[:, :, :, :Wo]
    return out


def _reference(x, v, g, b, *, stride, padding, activation):
    """Pure-JAX reference (matches PyTorch nn.Conv2d + weight_norm semantics)."""
    v32 = v.astype(jnp.float32)
    norm = jnp.sqrt(jnp.sum(v32 * v32, axis=(1, 2, 3), keepdims=True))
    w = g.astype(jnp.float32) * v32 / norm
    out = jax.lax.conv_general_dilated(
        x.astype(jnp.float32), w,
        window_strides=(stride, stride),
        padding=[(padding, padding), (padding, padding)],
        dimension_numbers=("NCHW", "OIHW", "NCHW"))
    out = out + b.reshape(1, -1, 1, 1)
    if activation is not None:
        out = activation(out)
    return out


if __name__ == "__main__":
    # WNConv2d(in_channel=4, out_channel=8, kernel_size=K, padding=pad)
    N, Cin, H, W = 2, 4, 16, 16
    Cout = 8

    key = jax.random.PRNGKey(0)
    kx, kv, kb = jax.random.split(key, 3)
    x = jax.random.normal(kx, (N, Cin, H, W), jnp.float32)

    configs = [
        (3, 1, None),          # "same" 3x3 conv (the PixelSNAIL default)
        (3, 1, jax.nn.elu),    # with activation
        (1, 0, None),          # 1x1 conv
        (3, 0, None),          # valid 3x3 conv (Wo != W path)
    ]
    for K, pad_, act in configs:
        # PyTorch Conv2d default init: U(-1/sqrt(fan_in), 1/sqrt(fan_in))
        fan_in = Cin * K * K
        bound = 1.0 / sqrt(fan_in)
        v = jax.random.uniform(kv, (Cout, Cin, K, K), jnp.float32, -bound, bound)
        bias = jax.random.uniform(kb, (Cout,), jnp.float32, -bound, bound)
        # weight_norm init: g = ||v|| per out channel (effective weight == v)
        g = jnp.sqrt(jnp.sum(v * v, axis=(1, 2, 3), keepdims=True))

        out = wn_conv2d(x, v, g, bias, stride=1, padding=pad_, activation=act)
        out = jax.block_until_ready(out)
        ref = _reference(x, v, g, bias, stride=1, padding=pad_, activation=act)
        np.testing.assert_allclose(np.asarray(out), np.asarray(ref),
                                   rtol=1e-5, atol=1e-5)
        assert out.shape == ref.shape

    print("KERNEL_OK")
</pallas_src>

<mosaic_0001>
module attributes {stable_mosaic.version = 11 : i64} {
  func.func @_wnconv2d_kernel(%arg0: i32, %arg1: i32, %arg2: memref<1x1x4x162xf32, #tpu.memory_space<vmem>>, %arg3: memref<1x3x128xf32, #tpu.memory_space<vmem>>, %arg4: memref<8x36xf32, #tpu.memory_space<vmem>>, %arg5: memref<8x1xf32, #tpu.memory_space<vmem>>, %arg6: memref<1x8x128xf32, #tpu.memory_space<vmem>>) attributes {dimension_semantics = [#tpu.dimension_semantics<parallel>, #tpu.dimension_semantics<parallel>], iteration_bounds = array<i64: 2, 2>, scalar_prefetch = 0 : i64, scratch_operands = 0 : i64, tpu.core_type = #tpu.core_type<tc>, window_params = [{transform_indices = @transform_0, window_bounds = array<i64: 1, 1, 4, 162>}, {transform_indices = @transform_1, window_bounds = array<i64: 1, 3, 128>}, {pipeline_mode = #tpu.pipeline_mode<synchronous>, transform_indices = @transform_2, window_bounds = array<i64: 8, 36>}, {pipeline_mode = #tpu.pipeline_mode<synchronous>, transform_indices = @transform_3, window_bounds = array<i64: 8, 1>}, {transform_indices = @transform_4, window_bounds = array<i64: 1, 8, 128>}]} {
    %c0 = arith.constant 0 : index
    %c0_0 = arith.constant 0 : index
    %c0_1 = arith.constant 0 : index
    %c0_2 = arith.constant 0 : index
    %0 = vector.load %arg2[%c0, %c0_0, %c0_1, %c0_2] : memref<1x1x4x162xf32, #tpu.memory_space<vmem>>, vector<1x1x4x162xf32>
    %1 = vector.shape_cast %0 : vector<1x1x4x162xf32> to vector<4x162xf32>
    %c0_3 = arith.constant 0 : index
    %c0_4 = arith.constant 0 : index
    %c0_5 = arith.constant 0 : index
    %2 = vector.load %arg3[%c0_3, %c0_4, %c0_5] : memref<1x3x128xf32, #tpu.memory_space<vmem>>, vector<1x3x128xf32>
    %3 = vector.shape_cast %2 : vector<1x3x128xf32> to vector<3x128xf32>
    %c0_6 = arith.constant 0 : index
    %c0_7 = arith.constant 0 : index
    %4 = vector.load %arg4[%c0_6, %c0_7] : memref<8x36xf32, #tpu.memory_space<vmem>>, vector<8x36xf32>
    %cst = arith.constant 0.000000e+00 : f32
    %5 = vector.broadcast %cst : f32 to vector<8x128xf32>
    %6 = vector.extract_strided_slice %1 {offsets = [0, 0], sizes = [4, 128], strides = [1, 1]} : vector<4x162xf32> to vector<4x128xf32>
    %7 = vector.extract_strided_slice %3 {offsets = [0, 0], sizes = [1, 128], strides = [1, 1]} : vector<3x128xf32> to vector<1x128xf32>
    %8 = vector.broadcast %7 : vector<1x128xf32> to vector<4x128xf32>
    %9 = arith.mulf %6, %8 : vector<4x128xf32>
    %10 = vector.extract_strided_slice %4 {offsets = [0, 0], sizes = [8, 4], strides = [1, 1]} : vector<8x36xf32> to vector<8x4xf32>
    %cst_8 = arith.constant dense<0.000000e+00> : vector<8x128xf32>
    %11 = tpu.matmul %10, %9, %cst_8 {dimension_numbers = #tpu.dot_dimension_numbers<[1], [0], [0], [1], [0, 0, 1, 1], [], []>} : vector<8x4xf32>, vector<4x128xf32>, vector<8x128xf32> -> vector<8x128xf32>
    %12 = arith.addf %5, %11 : vector<8x128xf32>
    %13 = vector.extract_strided_slice %1 {offsets = [0, 1], sizes = [4, 128], strides = [1, 1]} : vector<4x162xf32> to vector<4x128xf32>
    %14 = vector.extract_strided_slice %3 {offsets = [1, 0], sizes = [1, 128], strides = [1, 1]} : vector<3x128xf32> to vector<1x128xf32>
    %15 = vector.broadcast %14 : vector<1x128xf32> to vector<4x128xf32>
    %16 = arith.mulf %13, %15 : vector<4x128xf32>
    %17 = vector.extract_strided_slice %4 {offsets = [0, 4], sizes = [8, 4], strides = [1, 1]} : vector<8x36xf32> to vector<8x4xf32>
    %cst_9 = arith.constant dense<0.000000e+00> : vector<8x128xf32>
    %18 = tpu.matmul %17, %16, %cst_9 {dimension_numbers = #tpu.dot_dimension_numbers<[1], [0], [0], [1], [0, 0, 1, 1], [], []>} : vector<8x4xf32>, vector<4x128xf32>, vector<8x128xf32> -> vector<8x128xf32>
    %19 = arith.addf %12, %18 : vector<8x128xf32>
    %20 = vector.extract_strided_slice %1 {offsets = [0, 2], sizes = [4, 128], strides = [1, 1]} : vector<4x162xf32> to vector<4x128xf32>
    %21 = vector.extract_strided_slice %3 {offsets = [2, 0], sizes = [1, 128], strides = [1, 1]} : vector<3x128xf32> to vector<1x128xf32>
    %22 = vector.broadcast %21 : vector<1x128xf32> to vector<4x128xf32>
    %23 = arith.mulf %20, %22 : vector<4x128xf32>
    %24 = vector.extract_strided_slice %4 {offsets = [0, 8], sizes = [8, 4], strides = [1, 1]} : vector<8x36xf32> to vector<8x4xf32>
    %cst_10 = arith.constant dense<0.000000e+00> : vector<8x128xf32>
    %25 = tpu.matmul %24, %23, %cst_10 {dimension_numbers = #tpu.dot_dimension_numbers<[1], [0], [0], [1], [0, 0, 1, 1], [], []>} : vector<8x4xf32>, vector<4x128xf32>, vector<8x128xf32> -> vector<8x128xf32>
    %26 = arith.addf %19, %25 : vector<8x128xf32>
    %27 = vector.extract_strided_slice %1 {offsets = [0, 16], sizes = [4, 128], strides = [1, 1]} : vector<4x162xf32> to vector<4x128xf32>
    %28 = vector.extract_strided_slice %3 {offsets = [0, 0], sizes = [1, 128], strides = [1, 1]} : vector<3x128xf32> to vector<1x128xf32>
    %29 = vector.broadcast %28 : vector<1x128xf32> to vector<4x128xf32>
    %30 = arith.mulf %27, %29 : vector<4x128xf32>
    %31 = vector.extract_strided_slice %4 {offsets = [0, 12], sizes = [8, 4], strides = [1, 1]} : vector<8x36xf32> to vector<8x4xf32>
    %cst_11 = arith.constant dense<0.000000e+00> : vector<8x128xf32>
    %32 = tpu.matmul %31, %30, %cst_11 {dimension_numbers = #tpu.dot_dimension_numbers<[1], [0], [0], [1], [0, 0, 1, 1], [], []>} : vector<8x4xf32>, vector<4x128xf32>, vector<8x128xf32> -> vector<8x128xf32>
    %33 = arith.addf %26, %32 : vector<8x128xf32>
    %34 = vector.extract_strided_slice %1 {offsets = [0, 17], sizes = [4, 128], strides = [1, 1]} : vector<4x162xf32> to vector<4x128xf32>
    %35 = vector.extract_strided_slice %3 {offsets = [1, 0], sizes = [1, 128], strides = [1, 1]} : vector<3x128xf32> to vector<1x128xf32>
    %36 = vector.broadcast %35 : vector<1x128xf32> to vector<4x128xf32>
    %37 = arith.mulf %34, %36 : vector<4x128xf32>
    %38 = vector.extract_strided_slice %4 {offsets = [0, 16], sizes = [8, 4], strides = [1, 1]} : vector<8x36xf32> to vector<8x4xf32>
    %cst_12 = arith.constant dense<0.000000e+00> : vector<8x128xf32>
    %39 = tpu.matmul %38, %37, %cst_12 {dimension_numbers = #tpu.dot_dimension_numbers<[1], [0], [0], [1], [0, 0, 1, 1], [], []>} : vector<8x4xf32>, vector<4x128xf32>, vector<8x128xf32> -> vector<8x128xf32>
    %40 = arith.addf %33, %39 : vector<8x128xf32>
    %41 = vector.extract_strided_slice %1 {offsets = [0, 18], sizes = [4, 128], strides = [1, 1]} : vector<4x162xf32> to vector<4x128xf32>
    %42 = vector.extract_strided_slice %3 {offsets = [2, 0], sizes = [1, 128], strides = [1, 1]} : vector<3x128xf32> to vector<1x128xf32>
    %43 = vector.broadcast %42 : vector<1x128xf32> to vector<4x128xf32>
    %44 = arith.mulf %41, %43 : vector<4x128xf32>
    %45 = vector.extract_strided_slice %4 {offsets = [0, 20], sizes = [8, 4], strides = [1, 1]} : vector<8x36xf32> to vector<8x4xf32>
    %cst_13 = arith.constant dense<0.000000e+00> : vector<8x128xf32>
    %46 = tpu.matmul %45, %44, %cst_13 {dimension_numbers = #tpu.dot_dimension_numbers<[1], [0], [0], [1], [0, 0, 1, 1], [], []>} : vector<8x4xf32>, vector<4x128xf32>, vector<8x128xf32> -> vector<8x128xf32>
    %47 = arith.addf %40, %46 : vector<8x128xf32>
    %48 = vector.extract_strided_slice %1 {offsets = [0, 32], sizes = [4, 128], strides = [1, 1]} : vector<4x162xf32> to vector<4x128xf32>
    %49 = vector.extract_strided_slice %3 {offsets = [0, 0], sizes = [1, 128], strides = [1, 1]} : vector<3x128xf32> to vector<1x128xf32>
    %50 = vector.broadcast %49 : vector<1x128xf32> to vector<4x128xf32>
    %51 = arith.mulf %48, %50 : vector<4x128xf32>
    %52 = vector.extract_strided_slice %4 {offsets = [0, 24], sizes = [8, 4], strides = [1, 1]} : vector<8x36xf32> to vector<8x4xf32>
    %cst_14 = arith.constant dense<0.000000e+00> : vector<8x128xf32>
    %53 = tpu.matmul %52, %51, %cst_14 {dimension_numbers = #tpu.dot_dimension_numbers<[1], [0], [0], [1], [0, 0, 1, 1], [], []>} : vector<8x4xf32>, vector<4x128xf32>, vector<8x128xf32> -> vector<8x128xf32>
    %54 = arith.addf %47, %53 : vector<8x128xf32>
    %55 = vector.extract_strided_slice %1 {offsets = [0, 33], sizes = [4, 128], strides = [1, 1]} : vector<4x162xf32> to vector<4x128xf32>
    %56 = vector.extract_strided_slice %3 {offsets = [1, 0], sizes = [1, 128], strides = [1, 1]} : vector<3x128xf32> to vector<1x128xf32>
    %57 = vector.broadcast %56 : vector<1x128xf32> to vector<4x128xf32>
    %58 = arith.mulf %55, %57 : vector<4x128xf32>
    %59 = vector.extract_strided_slice %4 {offsets = [0, 28], sizes = [8, 4], strides = [1, 1]} : vector<8x36xf32> to vector<8x4xf32>
    %cst_15 = arith.constant dense<0.000000e+00> : vector<8x128xf32>
    %60 = tpu.matmul %59, %58, %cst_15 {dimension_numbers = #tpu.dot_dimension_numbers<[1], [0], [0], [1], [0, 0, 1, 1], [], []>} : vector<8x4xf32>, vector<4x128xf32>, vector<8x128xf32> -> vector<8x128xf32>
    %61 = arith.addf %54, %60 : vector<8x128xf32>
    %62 = vector.extract_strided_slice %1 {offsets = [0, 34], sizes = [4, 128], strides = [1, 1]} : vector<4x162xf32> to vector<4x128xf32>
    %63 = vector.extract_strided_slice %3 {offsets = [2, 0], sizes = [1, 128], strides = [1, 1]} : vector<3x128xf32> to vector<1x128xf32>
    %64 = vector.broadcast %63 : vector<1x128xf32> to vector<4x128xf32>
    %65 = arith.mulf %62, %64 : vector<4x128xf32>
    %66 = vector.extract_strided_slice %4 {offsets = [0, 32], sizes = [8, 4], strides = [1, 1]} : vector<8x36xf32> to vector<8x4xf32>
    %cst_16 = arith.constant dense<0.000000e+00> : vector<8x128xf32>
    %67 = tpu.matmul %66, %65, %cst_16 {dimension_numbers = #tpu.dot_dimension_numbers<[1], [0], [0], [1], [0, 0, 1, 1], [], []>} : vector<8x4xf32>, vector<4x128xf32>, vector<8x128xf32> -> vector<8x128xf32>
    %68 = arith.addf %61, %67 : vector<8x128xf32>
    %c0_17 = arith.constant 0 : index
    %c0_18 = arith.constant 0 : index
    %69 = vector.load %arg5[%c0_17, %c0_18] : memref<8x1xf32, #tpu.memory_space<vmem>>, vector<8x1xf32>
    %70 = vector.broadcast %69 : vector<8x1xf32> to vector<8x128xf32>
    %71 = arith.addf %68, %70 : vector<8x128xf32>
    %c0_19 = arith.constant 0 : index
    %c0_20 = arith.constant 0 : index
    %c0_21 = arith.constant 0 : index
    %72 = vector.load %arg6[%c0_19, %c0_20, %c0_21] : memref<1x8x128xf32, #tpu.memory_space<vmem>>, vector<1x8x128xf32>
    %73 = vector.shape_cast %72 : vector<1x8x128xf32> to vector<8x128xf32>
    %74 = vector.shape_cast %71 : vector<8x128xf32> to vector<1x8x128xf32>
    tpu.vector_store %arg6[%c0_19, %c0_20, %c0_21], %74 {strides = array<i32>} : memref<1x8x128xf32, #tpu.memory_space<vmem>>, vector<1x8x128xf32>,
    return
  }
  func.func @transform_0(%arg0: i32, %arg1: i32) -> (i32, i32, i32, i32) {
    %c0_i32 = arith.constant 0 : i32
    %c0_i32_0 = arith.constant 0 : i32
    %c0_i32_1 = arith.constant 0 : i32
    return %arg0, %arg1, %c0_i32, %c0_i32_0 : i32, i32, i32, i32
  }
  func.func @transform_1(%arg0: i32, %arg1: i32) -> (i32, i32, i32) {
    %c0_i32 = arith.constant 0 : i32
    %c0_i32_0 = arith.constant 0 : i32
    %c0_i32_1 = arith.constant 0 : i32
    return %arg1, %c0_i32, %c0_i32_0 : i32, i32, i32
  }
  func.func @transform_2(%arg0: i32, %arg1: i32) -> (i32, i32) {
    %c0_i32 = arith.constant 0 : i32
    %c0_i32_0 = arith.constant 0 : i32
    %c0_i32_1 = arith.constant 0 : i32
    return %c0_i32, %c0_i32_0 : i32, i32
  }
  func.func @transform_3(%arg0: i32, %arg1: i32) -> (i32, i32) {
    %c0_i32 = arith.constant 0 : i32
    %c0_i32_0 = arith.constant 0 : i32
    %c0_i32_1 = arith.constant 0 : i32
    return %c0_i32, %c0_i32_0 : i32, i32
  }
  func.func @transform_4(%arg0: i32, %arg1: i32) -> (i32, i32, i32) {
    %c0_i32 = arith.constant 0 : i32
    %c0_i32_0 = arith.constant 0 : i32
    return %arg0, %c0_i32, %arg1 : i32, i32, i32
  }
}

</mosaic_0001>

<bundles_post_ra>
// kernel: tpu_custom_call.1
= control target key start
LH: loop header
LB: loop body
LE: loop exit
PB: predicated region body
PF: predicated region fallthrough
CT: control target
= control target key end

     0   :  { %9 = vsyncpa [#allocation3], 0  ;;  %s1288_s0 = inlined_call_operand.hbm [shape: f32[2,2,4,162], index: 0, kind: input, shape index: {}]   ;;  %s1289_s1 = inlined_call_operand.vmem [shape: f32[2,3,128], index: 1, kind: input, shape index: {}]   ;;  %s1290_s2 = inlined_call_operand.vmem [shape: f32[8,36], index: 2, kind: input, shape index: {}]   ;;  %s1291_s3 = inlined_call_operand.vmem [shape: f32[8,1], index: 3, kind: input, shape index: {}]   ;;  %s1292_s4 = inlined_call_operand.hbm [shape: f32[2,8,256], index: 4, kind: output, shape index: {}]  }
   0x1   :  { %11 = vsyncpa [#allocation3 + $0x1], 0 }
   0x2   :  { %12 = vsyncpa [#allocation4], 0 }
   0x3   :  { %14 = vsyncpa [#allocation4 + $0x1], 0  ;;  %s1080_s15 = smov 0   ;;  %s1082_s16 = smov 0  }
   0x4   :  { %s1084_s17 = smov 0   ;;  %s1086_s18 = smov 0  }
   0x5   :  { %s1088_s19 = smov 0   ;;  %s1090_s20 = smov 0  }
   0x6   :  { %s1092_s21 = smov 0   ;;  %s1094_s22 = smov 0  }
   0x7 LB: > { %s764_s23 = sadd.s32 4294967295, %s1030_s22   ;;  %s765_s24 = sadd.s32 4294967294, %s1030_s22   ;;  %s1030_s22 = sphi %s1094_s22, %s20_s22   ;;  %s1026_s21 = sphi %s1092_s21, %s1309_s21   ;;  %s1022_s20 = sphi %s1090_s20, %s1308_s20   ;;  %s1018_s19 = sphi %s1088_s19, %s1307_s19   ;;  %s1014_s18 = sphi %s1086_s18, %s1306_s18   ;;  %s1010_s17 = sphi %s1084_s17, %s1305_s17   ;;  %s1006_s16 = sphi %s1082_s16, %s1304_s16   ;;  %s1002_s15 = sphi %s1080_s15, %s1303_s15  }
   0x8   : > { %s29_s25 = sadd.s32 1, %s1022_s20  ;;  %s32_s26 = sadd.s32 1, %s1026_s21 }
   0x9   : > { %p30_p0 = scmp.ge.s32.totalorder %s29_s25, 2  ;;  %s41_s27 = sadd.s32 1, %s1010_s17 }
   0xa   : > { %p48_p1 = scmp.ne.s32.totalorder %s1010_s17, %s1006_s16  ;;  %p49_p2 = scmp.eq.s32.totalorder %s1030_s22, 0 }
   0xb   : > { %s1311_s25 = smov (%p30_p0, %s29_s25), 0  ;;  %s1313_s26 = smov (!%p30_p0, %s32_s26), %s1026_s21 }
   0xc   : > { %1295 = sst [smem:[#allocation8_spill]] %s1311_s25  ;;  %s37_s28 = ssub.s32 %s1022_s20, %s1311_s25 }
   0xd   : > { %p1133_p3 = por %p49_p2, %p48_p1  ;;  %p34_p4 = scmp.ge.s32.totalorder %s1313_s26, 2 }
   0xe   : > { %p54_p5 = scmp.ne.s32.totalorder %s1006_s16, %s1002_s15  ;;  %p55_p6 = scmp.eq.s32.totalorder %s764_s23, 0 }
   0xf   : > { %p148_p7 = scmp.eq.s32.totalorder %s764_s23, 3  ;;  %s1315_s26 = smov (%p34_p4, %s1313_s26), 0 }
  0x10   : > { %1297 = sst [smem:[#allocation9_spill]] %s1315_s26  ;;  %p1141_p8 = por %p55_p6, %p54_p5 }
  0x11   : > { %p1145_p9 = por %p148_p7, %p48_p1  ;;  %s36_s6 = ssub.s32 %s1026_s21, %s1315_s26 }
  0x12   : > { %p154_p10 = scmp.eq.s32.totalorder %s765_s24, 3  ;;  %s38_s7 = sor.u32 %s37_s28, %s36_s6 }
  0x13   : > { %p39_p11 = scmp.eq.s32.totalorder %s38_s7, 0  ;;  %p811_p13 = scmp.lt.s32.totalorder %s1030_s22, 4 }
  0x14   : > { %p1151_p12 = por %p154_p10, %p54_p5  ;;  %s180_s9 = sand.u32 1, %s1010_s17  }
  0x15   : > { %s1158_s10 = scalar_select %p39_p11, %s1010_s17, %s41_s27  }
  0x16   : > { %s768_s11 = sshll.u32 %s180_s9, 3  ;;  %s769_s12 = sshll.u32 %s1022_s20, 1 }
  0x17   : > { %s770_s13 = sshll.u32 %s1026_s21, 2  ;;  %s184_s14 = scalar_lea.vmem [#allocation2], %s768_s11 }
  0x18   : > { %s195_s23 = sshll.u32 %s184_s14, 4  ;;  %s189_s26 = sadd.s32 %s770_s13, %s769_s12  ;;  %s196_s23 = int_to_ptr.vmem [resolvable:$true] %s195_s23 }
  0x19   : > { %s771_s24 = sshll.u32 %s189_s26, 2  ;;  %p804_p0 = pnand %p811_p13, %p1133_p3 }
  0x1a   : > { %s191_s7 = scalar_lea.hbm %s1288_s0, %s771_s24  ;;  %p772_p1 = scmp.ge.s32.totalorder %s1030_s22, 1 }
  0x1b   : > { %s193_s25 = sshll.u32 %s191_s7, 4  ;;  %p207_p2 = scmp.lt.s32.totalorder %s1030_s22, 5  ;;  %s194_s25 = int_to_ptr.hbm [resolvable:$true] %s193_s25 }
  0x1c   : > { %s181_s27 = scalar_lea.sflag [#allocation3], %s180_s9 }
  0x1d   : > { %806 = dma.hbm_to_vmem [thread:$0]  (!%p804_p0), %s194_s25, 128, %s196_s23, %s181_s27  }
  0x1e   : > { %p208_p4 = pnand %p772_p1, %p207_p2 }
  0x1f   : > { %s1170_s11 = sand.u32 (!%p208_p4), 1, %s1006_s16  }
  0x20   : > { %211 = sbr.rel (%p208_p4) target bundleno = 488 (0x1e8), region = 36  ;;  %s773_s26 = sshll.u32 (!%p208_p4), %s1170_s11, 3 }
  0x21   : > { %s214_s29 = scalar_lea.sflag (!%p208_p4), [#allocation3], %s1170_s11  ;;  %s1176_s12 = scalar_lea.vmem (!%p208_p4), [#allocation2], %s773_s26 }
  0x25   : > { %993 = dma.done.wait (%p1141_p8), %s214_s29, 128  }
  0x26   : > { %995 = vsyncadd (%p1141_p8), %s214_s29, 4294967168  ;;  %p247_p3 = scmp.lt.s32.totalorder %s1014_s18, 1  ;;  %s1032_s24 = smov 1   ;;  %v1194_v4 = vld [vmem:[%s1290_s2] sm:$0xff]  ;;  %vm261_vm0 = vcmask 7168   ;;  %v1203_v6 = vld [vmem:[%s1176_s12] sm:$0xff] }
  0x27   : > { %s1033_s28 = smov 16   ;;  %s1034_s30 = smov 18   ;;  %vm334_vm1 = vcmask 15360   ;;  %vm379_vm2 = vcmask 130048   ;;  %vm423_vm3 = vcmask 138240   ;;  %vm467_vm4 = vcmask 146432  }
  0x28   : > { %s248_s25 = scalar_select %p247_p3, %s1014_s18, 1  ;;  %vm511_vm5 = vcmask 261120   ;;  %vm555_vm6 = vcmask 269312   ;;  %vm599_vm7 = vcmask 277504   ;;  %vm281_vm8 = vcmask 1043456  }
  0x29   : > { %s1035_s6 = smov 2   ;;  %s1036_s7 = smov 17   ;;  %vm278_vm9 = vcmask 31744   ;;  %vm276_vm10 = vcmask 1039360   ;;  %vm348_vm11 = vcmask 1031168   ;;  %vm393_vm12 = vcmask 916480  }
  0x2a   : > { %s775_s9 = sshll.u32 %s248_s25, 2  ;;  %s1037_s27 = smov 32   ;;  %vm437_vm13 = vcmask 908288   ;;  %vm481_vm14 = vcmask 900096   ;;  %vm525_vm15 = vcmask 785408  }
  0x2b   : > { %s250_s23 = scalar_lea.vmem %s1289_s1, %s775_s9  ;;  %s1038_s29 = smov 33  }
  0x2c   : > { %v252_v0 = vld [vmem:[%s250_s23] sm:$0x7]  ;;  %s1039_s25 = smov 34   ;;  %s1040_s14 = smov 120  }
  0x2d   : > { %v256_v1 = vperm.slane %v252_v0, 1  ;;  %v1187_v2 = vperm.slane %v252_v0, 0  ;;  %v329_v3 = vperm.slane %v252_v0, 2  ;;  %s1041_s23 = smov 116   ;;  %s1046_s12 = smov 126  }
  0x2e   : > { %s1051_s9 = smov 95   ;;  %s1052_s13 = smov 94  }
  0x2f   : > { %258 = vrot.lane.b32.xlu0 %v256_v1, %s1032_s24  ;;  %376 = vrot.lane.b32.xlu1 %v1187_v2, %s1033_s28  ;;  %s1042_s24 = smov 124   ;;  %s1043_s28 = smov 104   ;;  %v255_v55 = vmul.f32 %v1187_v2, %v1203_v6 }
  0x30   : > { %464 = vrot.lane.b32.xlu2 %v329_v3, %s1034_s30  ;;  %s1044_s30 = smov 112  }
  0x31   : > { %778 = vmatpush.msk.msra.mxu1 %vm281_vm8, %v255_v55 }
  0x32   : > { %779 = vmatmul.msk.f32.vlgmr.msra.gmra.mxu1 %vm278_vm9, %v1194_v4 }
  0x37   : > { %331 = vrot.lane.b32.xlu0 %v329_v3, %s1035_s6  ;;  %420 = vrot.lane.b32.xlu1 %v256_v1, %s1036_s7  ;;  %s1045_s6 = smov 127   ;;  %s1047_s7 = smov 111  }
  0x38   : > { %508 = vrot.lane.b32.xlu2 %v1187_v2, %s1037_s27  ;;  %s1048_s27 = smov 110  }
  0x3f   : > { %552 = vrot.lane.b32.xlu0 %v256_v1, %s1038_s29  ;;  %596 = vrot.lane.b32.xlu1 %v329_v3, %s1039_s25  ;;  %s1049_s29 = smov 96   ;;  %s1050_s25 = smov 100  }
  0x47   : > { %338 = vrot.lane.b32.xlu0 %v1194_v4, %s1040_s14  ;;  %383 = vrot.lane.b32.xlu1 %v1194_v4, %s1041_s23  ;;  %s1053_s14 = smov 108  }
  0x4f   : > { %266 = vrot.lane.b32.xlu0 %v1194_v4, %s1042_s24  ;;  %s952_s24 = scalar_lea.hbm %s1292_s4, 32 }
  0x57   : > { %515 = vrot.lane.b32.xlu0 %v1194_v4, %s1043_s28  ;;  %s795_s28 = sshll.u32 %s1018_s19, 1 }
  0x5f   : > { %427 = vrot.lane.b32.xlu0 %v1194_v4, %s1044_s30 }
  0x8a   : > { %v465_v24 = vpop.permute.xlu2 %464 }
  0x8b   : > { %v466_v27 = vrot.slane %v465_v24, 4 }
  0x8d   : > { %v468_v30 = vsel %vm467_vm4, %v466_v27, %v465_v24 }
  0x8e   : > { %v470_v32 = vmul.f32 %v468_v30, %v1203_v6 }
  0x92   : > { %v509_v31 = vpop.permute.xlu2 %508 }
  0x93   : > { %v510_v33 = vrot.slane %v509_v31, 4 }
  0x95   : > { %v512_v36 = vsel %vm511_vm5, %v510_v33, %v509_v31 }
  0x96   : > { %v514_v38 = vmul.f32 %v512_v36, %v1203_v6 }
  0xa1   : > { %v259_v5 = vpop.permute.xlu0 %258  ;;  %v377_v10 = vpop.permute.xlu1 %376 }
  0xa2   : > { %v260_v7 = vrot.slane %v259_v5, 4  ;;  %v378_v15 = vrot.slane %v377_v10, 4 }
  0xa4   : > { %v262_v8 = vsel %vm261_vm0, %v260_v7, %v259_v5  ;;  %v380_v18 = vsel %vm379_vm2, %v378_v15, %v377_v10  ;;  %vm569_vm0 = vcmask 777216  }
  0xa5   : > { %v264_v9 = vmul.f32 %v262_v8, %v1203_v6  ;;  %v382_v20 = vmul.f32 %v380_v18, %v1203_v6 }
  0xa7   : > { %269 = vst [vmem:[#allocation1] ss:$2 sm:$0xff] %v264_v9 }
  0xa9   : > { %v332_v11 = vpop.permute.xlu0 %331  ;;  %v421_v19 = vpop.permute.xlu1 %420 }
  0xaa   : > { %v333_v12 = vrot.slane %v332_v11, 4  ;;  %v422_v21 = vrot.slane %v421_v19, 4 }
  0xac   : > { %v335_v13 = vsel %vm334_vm1, %v333_v12, %v332_v11  ;;  %v424_v25 = vsel %vm423_vm3, %v422_v21, %v421_v19  ;;  %v640_v11 = vld [vmem:[%s1291_s3] sm:$0xff]  ;;  %v1054_v12 = vmov 0   ;;  %vm613_vm1 = vcmask 769024  }
  0xad   : > { %v337_v14 = vmul.f32 %v335_v13, %v1203_v6  ;;  %v426_v26 = vmul.f32 %v424_v25, %v1203_v6  ;;  %900 = vset.pattern.permute.xlu2 %v1054_v12  ;;  %901 = vset.pattern.permute.xlu0 %v1054_v12 }
  0xae   : > { %v270_v16 = vld.sshfl [vmem:[#allocation1] sm:$0xff pattern:$0x75316420]  ;;  %v271_v17 = vld.sshfl [vmem:[#allocation1 + $0x8] sm:$0xff pattern:$0x75316420] }
  0xaf   : > { %341 = vst [vmem:[#allocation1] ss:$2 sm:$0xff] %v337_v14  ;;  %274 = vrot.lane.b32.xlu2 %v271_v17, %s1045_s6  ;;  %272 = vrot.lane.b32.xlu1 %v270_v16, %s1045_s6 }
  0xb1   : > { %v553_v37 = vpop.permute.xlu0 %552  ;;  %v597_v42 = vpop.permute.xlu1 %596 }
  0xb2   : > { %v554_v39 = vrot.slane %v553_v37, 4  ;;  %v598_v44 = vrot.slane %v597_v42, 4 }
  0xb4   : > { %v556_v43 = vsel %vm555_vm6, %v554_v39, %v553_v37  ;;  %v600_v48 = vsel %vm599_vm7, %v598_v44, %v597_v42 }
  0xb5   : > { %v558_v45 = vmul.f32 %v556_v43, %v1203_v6  ;;  %v602_v49 = vmul.f32 %v600_v48, %v1203_v6 }
  0xb6   : > { %v343_v22 = vld.sshfl [vmem:[#allocation1 + $0x8] sm:$0xff pattern:$0x75316420]  ;;  %v342_v23 = vld.sshfl [vmem:[#allocation1] sm:$0xff pattern:$0x75316420] }
  0xb7   : > { %346 = vrot.lane.b32.xlu0 %v343_v22, %s1046_s12  ;;  %344 = vrot.lane.b32.xlu2 %v342_v23, %s1046_s12  ;;  %386 = vst [vmem:[#allocation1] ss:$2 sm:$0xff] %v382_v20 }
  0xb9   : > { %v339_v54 = vpop.permute.xlu0 %338  ;;  %v384_v59 = vpop.permute.xlu1 %383 }
  0xbe   : > { %v388_v28 = vld.sshfl [vmem:[#allocation1 + $0x8] sm:$0xff pattern:$0x75316420]  ;;  %v387_v29 = vld.sshfl [vmem:[#allocation1] sm:$0xff pattern:$0x75316420] }
  0xbf   : > { %391 = vrot.lane.b32.xlu2 %v388_v28, %s1044_s30  ;;  %389 = vrot.lane.b32.xlu1 %v387_v29, %s1044_s30  ;;  %430 = vst [vmem:[#allocation1] ss:$2 sm:$0xff] %v426_v26  ;;  %v326_v26 = vpop.f32.mrf.mxu1  ;;  %s659_s30 = sadd.s32 %s1014_s18, %s795_s28  ;;  %s649_s18 = scalar_lea.sflag [#allocation4], %s1170_s11 }
  0xc0   : > { %s796_s6 = sshll.u32 %s659_s30, 3 }
  0xc1   : > { %v267_v56 = vpop.permute.xlu0 %266 }
  0xc6   : > { %v432_v34 = vld.sshfl [vmem:[#allocation1 + $0x8] sm:$0xff pattern:$0x75316420]  ;;  %v431_v35 = vld.sshfl [vmem:[#allocation1] sm:$0xff pattern:$0x75316420] }
  0xc7   : > { %435 = vrot.lane.b32.xlu2 %v432_v34, %s1047_s7  ;;  %433 = vrot.lane.b32.xlu1 %v431_v35, %s1047_s7  ;;  %474 = vst [vmem:[#allocation1] ss:$2 sm:$0xff] %v470_v32 }
  0xc9   : > { %v516_v58 = vpop.permute.xlu0 %515 }
  0xce   : > { %v476_v40 = vld.sshfl [vmem:[#allocation1 + $0x8] sm:$0xff pattern:$0x75316420]  ;;  %v475_v41 = vld.sshfl [vmem:[#allocation1] sm:$0xff pattern:$0x75316420] }
  0xcf   : > { %479 = vrot.lane.b32.xlu2 %v476_v40, %s1048_s27  ;;  %477 = vrot.lane.b32.xlu1 %v475_v41, %s1048_s27  ;;  %518 = vst [vmem:[#allocation1] ss:$2 sm:$0xff] %v514_v38  ;;  %s661_s27 = scalar_lea.hbm %s1292_s4, %s796_s6 }
  0xd1   : > { %v428_v61 = vpop.permute.xlu0 %427 }
  0xd6   : > { %v520_v46 = vld.sshfl [vmem:[#allocation1 + $0x8] sm:$0xff pattern:$0x75316420]  ;;  %v519_v47 = vld.sshfl [vmem:[#allocation1] sm:$0xff pattern:$0x75316420] }
  0xd7   : > { %523 = vrot.lane.b32.xlu0 %v520_v46, %s1049_s29  ;;  %521 = vrot.lane.b32.xlu2 %v519_v47, %s1049_s29  ;;  %562 = vst [vmem:[#allocation1] ss:$2 sm:$0xff] %v558_v45 }
  0xde   : > { %v564_v50 = vld.sshfl [vmem:[#allocation1 + $0x8] sm:$0xff pattern:$0x75316420]  ;;  %v563_v51 = vld.sshfl [vmem:[#allocation1] sm:$0xff pattern:$0x75316420] }
  0xdf   : > { %559 = vrot.lane.b32.xlu0 %v1194_v4, %s1050_s25  ;;  %567 = vrot.lane.b32.xlu2 %v564_v50, %s1051_s9  ;;  %606 = vst [vmem:[#allocation1] ss:$2 sm:$0xff] %v602_v49  ;;  %s665_s25 = sshll.u32 %s661_s27, 4  ;;  %s666_s25 = int_to_ptr.hbm [resolvable:$true] %s665_s25 }
  0xe0   : > { %565 = vrot.lane.b32.xlu1 %v563_v51, %s1051_s9  ;;  %s946_s9 = sshra.s32 %s666_s25, 4  ;;  %s947_s9 = int_to_ptr.hbm [resolvable:$true] %s946_s9 }
  0xe1   : > { %p953_p8 = scmp.lt.s32.totalorder %s947_s9, %s1292_s4 }
  0xe6   : > { %v608_v52 = vld.sshfl [vmem:[#allocation1 + $0x8] sm:$0xff pattern:$0x75316420]  ;;  %v607_v53 = vld.sshfl [vmem:[#allocation1] sm:$0xff pattern:$0x75316420] }
  0xe7   : > { %611 = vrot.lane.b32.xlu0 %v608_v52, %s1052_s13  ;;  %609 = vrot.lane.b32.xlu2 %v607_v53, %s1052_s13  ;;  %s948_s13 = scalar_lea.hbm %s947_s9, 8 }
  0xe8   : > { %471 = vrot.lane.b32.xlu1 %v1194_v4, %s1053_s14  ;;  %p949_p5 = scmp.ne.s32.totalorder %s947_s9, %s948_s13  ;;  %p954_p10 = scmp.lt.s32.totalorder %s952_s24, %s948_s13 }
  0xea   : > { %p950_p6 = pnand %p949_p5, %p1145_p9  ;;  %p955_p11 = por %p954_p10, %p953_p8 }
  0xec   : > { %p951_p7 = pneg %p950_p6 }
  0xee   : > { %p956_p13 = pnand %p955_p11, %p951_p7 }
  0xef   : > { %643 = vperm.xlu2 %900, %v640_v11  }
  0xf0   : > { %603 = vrot.lane.b32.xlu1 %v1194_v4, %s1049_s29  ;;  %s246_s29 = scalar_lea.vmem [#allocation5], %s773_s26 }
  0xf1   : > { %s663_s19 = sshll.u32 %s246_s29, 4  ;;  %s664_s19 = int_to_ptr.vmem [resolvable:$true] %s663_s19 }
 0x109   : > { %v275_v57 = vpop.permute.xlu2 %274 }
 0x111   : > { %v345_v60 = vpop.permute.xlu2 %344 }
 0x119   : > { %v392_v0 = vpop.permute.xlu2 %391 }
 0x121   : > { %v273_v62 = vpop.permute.xlu1 %272  ;;  %v436_v5 = vpop.permute.xlu2 %435 }
 0x122   : > { %v277_v63 = vsel %vm276_vm10, %v273_v62, %v275_v57 }
 0x123   : > { %776 = vmatpush.msk.msra.mxu0 %vm281_vm8, %v277_v63 }
 0x124   : > { %777 = vmatmul.msk.f32.vlgmr.msra.gmra.mxu0 %vm278_vm9, %v267_v56 }
 0x129   : > { %v347_v1 = vpop.permute.xlu0 %346  ;;  %v480_v8 = vpop.permute.xlu2 %479 }
 0x12a   : > { %v349_v2 = vsel %vm348_vm11, %v345_v60, %v347_v1 }
 0x12b   : > { %780 = vmatpush.msk.msra.mxu2 %vm281_vm8, %v349_v2 }
 0x12c   : > { %781 = vmatmul.msk.f32.vlgmr.msra.gmra.mxu2 %vm278_vm9, %v339_v54 }
 0x131   : > { %v390_v3 = vpop.permute.xlu1 %389  ;;  %v522_v13 = vpop.permute.xlu2 %521 }
 0x132   : > { %v394_v4 = vsel %vm393_vm12, %v390_v3, %v392_v0 }
 0x133   : > { %782 = vmatpush.msk.msra.mxu3 %vm281_vm8, %v394_v4 }
 0x134   : > { %783 = vmatmul.msk.f32.vlgmr.msra.gmra.mxu3 %vm278_vm9, %v384_v59 }
 0x139   : > { %v434_v6 = vpop.permute.xlu1 %433  ;;  %v568_v16 = vpop.permute.xlu2 %567 }
 0x13a   : > { %v438_v7 = vsel %vm437_vm13, %v434_v6, %v436_v5 }
 0x13b   : > { %784 = vmatpush.msk.msrb.mxu0 %vm281_vm8, %v438_v7 }
 0x13c   : > { %785 = vmatmul.msk.f32.vlgmr.msrb.gmra.mxu0 %vm278_vm9, %v428_v61 }
 0x141   : > { %v478_v9 = vpop.permute.xlu1 %477  ;;  %v610_v20 = vpop.permute.xlu2 %609 }
 0x142   : > { %v482_v10 = vsel %vm481_vm14, %v478_v9, %v480_v8 }
 0x143   : > { %786 = vmatpush.msk.msrb.mxu1 %vm281_vm8, %v482_v10 }
 0x149   : > { %v524_v14 = vpop.permute.xlu0 %523  ;;  %v644_v41 = vpop.permute.xlu2 %643 }
 0x14a   : > { %v526_v15 = vsel %vm525_vm15, %v522_v13, %v524_v14 }
 0x14b   : > { %788 = vmatpush.msk.msrb.mxu2 %vm281_vm8, %v526_v15 }
 0x14c   : > { %789 = vmatmul.msk.f32.vlgmr.msrb.gmra.mxu2 %vm278_vm9, %v516_v58 }
 0x151   : > { %v560_v17 = vpop.permute.xlu0 %559 }
 0x152   : > { %v566_v18 = vpop.permute.xlu1 %565 }
 0x153   : > { %v570_v19 = vsel %vm569_vm0, %v566_v18, %v568_v16 }
 0x154   : > { %790 = vmatpush.msk.msrb.mxu3 %vm281_vm8, %v570_v19 }
 0x155   : > { %791 = vmatmul.msk.f32.vlgmr.msrb.gmra.mxu3 %vm278_vm9, %v560_v17 }
 0x159   : > { %v612_v21 = vpop.permute.xlu0 %611 }
 0x15a   : > { %v472_v22 = vpop.permute.xlu1 %471  ;;  %v614_v23 = vsel %vm613_vm1, %v610_v20, %v612_v21 }
 0x15b   : > { %787 = vmatmul.msk.f32.vlgmr.msrb.gmra.mxu1 %vm278_vm9, %v472_v22  ;;  %792 = vmatpush.msk.msra.mxu0 %vm281_vm8, %v614_v23 }
 0x162   : > { %v604_v24 = vpop.permute.xlu1 %603 }
 0x163   : > { %793 = vmatmul.msk.f32.vlgmr.msra.gmra.mxu0 %vm278_vm9, %v604_v24 }
 0x1a1   : > { %v301_v25 = vpop.f32.mrf.mxu0 }
 0x1a2   : > { %v327_v27 = vadd.f32 %v326_v26, %v301_v25 }
 0x1af   : > { %v371_v28 = vpop.f32.mrf.mxu2 }
 0x1b0   : > { %v374_v30 = vadd.f32 %v371_v28, %v327_v27 }
 0x1b7   : > { %v416_v29 = vpop.f32.mrf.mxu3 }
 0x1b8   : > { %v419_v31 = vadd.f32 %v416_v29, %v374_v30 }
 0x1b9   : > { %v460_v32 = vpop.f32.mrf.mxu0 }
 0x1ba   : > { %v463_v33 = vadd.f32 %v460_v32, %v419_v31 }
 0x1cf   : > { %v548_v36 = vpop.f32.mrf.mxu2 }
 0x1d8   : > { %v504_v34 = vpop.f32.mrf.mxu1  ;;  %v592_v38 = vpop.f32.mrf.mxu3 }
 0x1d9   : > { %v507_v35 = vadd.f32 %v504_v34, %v463_v33 }
 0x1db   : > { %v551_v37 = vadd.f32 %v548_v36, %v507_v35 }
 0x1dd   : > { %v595_v39 = vadd.f32 %v592_v38, %v551_v37 }
 0x1e0   : > { %v636_v40 = vpop.f32.mrf.mxu0 }
 0x1e1   : > { %v639_v42 = vadd.f32 %v636_v40, %v595_v39 }
 0x1e3   : > { %v646_v43 = vadd.f32 %v644_v41, %v639_v42 }
 0x1e5   : > { %647 = vst [vmem:[%s246_s29] sm:$0xff] %v646_v43 }
 0x1e6   : > { %959 = shalt.err (!%p956_p13)
}
 0x1e7   : > { %801 = dma.vmem_to_hbm [thread:$0]  (%p1145_p9), %s664_s19, 128, %s666_s25, %s649_s18  }
 0x1e8 PF: > { %p812_p0 = scmp.ge.s32.totalorder %s1030_s22, 2  ;;  %s677_s11 = sand.u32 1, %s1002_s15  }
 0x1e9   : > { %s678_s30 = scalar_lea.sflag [#allocation4], %s677_s11 }
 0x1ea   : > { %p808_p1 = pnand %p812_p0, %p1151_p12 }
 0x1ec   : > { %p809_p2 = pneg %p808_p1 }
 0x1ee   : > { %997 = dma.done.wait (%p809_p2), %s678_s30, 128  }
 0x1ef   : > { %999 = vsyncadd (%p809_p2), %s678_s30, 4294967168  ;;  %s20_s22 = sadd.s32 1, %s1030_s22   ;;  %s1301_s5 = sld [smem:[#allocation8_spill]] }
 0x1f0   : > { %p17_p4 = scmp.ge.s32.totalorder %s20_s22, 6   ;;  %s1302_s6 = sld [smem:[#allocation9_spill]] }
 0x1f1   : > { %s1303_s15 = smov %s1006_s16  ;;  %s1304_s16 = smov %s1010_s17 }
 0x1f2   : > { %s1305_s17 = smov %s1158_s10  ;;  %s1306_s18 = smov %s1022_s20 }
 0x1f3   : > { %s1307_s19 = smov %s1026_s21  ;;  %19 = sbr.rel (!%p17_p4) target bundleno = 7 (0x7), region = 84 }
 0x1f5   : > { %s1308_s20 = smov %s1301_s5 }
 0x1f6   : > { %s1309_s21 = smov %s1302_s6 }
 0x1f8   :  { %684 = vsyncpa [#allocation3], 1 }
 0x1f9   :  { %686 = vsyncpa [#allocation3 + $0x1], 1 }
 0x1fa   :  { %687 = vsyncpa [#allocation4], 1 }
 0x1fb   :  { %689 = vsyncpa [#allocation4 + $0x1], 1 }

</bundles_post_ra>
